<compile_context>
chip_gen: v7x
topology: tpu7x:2x2x1
jax: 0.10.0
libtpu: 0.0.40
codegen_flags: <defaults>
</compile_context>

<pallas_src>
import functools

import jax
import jax.numpy as jnp
from jax.experimental import pallas as pl
from jax.experimental.pallas import tpu as pltpu

N_FEATURE = 5
N_HIDDEN = [15, 15, 15, 15]
N_OUTPUT = 1

LANE = 128       # TPU lane width; batch is tiled along lanes
IN_PAD = 8       # input features (5) padded to one sublane group; row 5 = constant-1 channel
HID_PAD = 16     # hidden width (15) padded to 2 sublanes; row 15 = constant-1 channel
OUT_PAD = 8      # last-layer rows padded to one sublane group; row 0 is the real output
MAX_TILE_B = 2048


def _make_mlp_kernel(n_layers):
    """5-layer MLP on one batch tile; activations are (features, batch), biases folded in."""
    def kernel(x_ref, *rest):
        w_refs = rest[:n_layers]
        o_ref = rest[n_layers]
        h = x_ref[...]                                            # (IN_PAD, tile_b)
        for li in range(n_layers):
            h = jnp.dot(w_refs[li][...], h,
                        preferred_element_type=jnp.float32)       # (16 or 8, tile_b)
            if li != n_layers - 1:
                h = jnp.maximum(h, 0.0)
        # Only sublane 0 carries the real 1-wide output; store it lane-dense.
        o_ref[...] = h[0:1, :].astype(o_ref.dtype)
    return kernel


def _pick_tile_b(batch):
    """>=2 grid steps when the batch spans >1 lane group; cap keeps h in registers."""
    target = -(-batch // 2)
    tile = -(-target // LANE) * LANE
    return int(max(LANE, min(tile, MAX_TILE_B)))


@functools.partial(jax.jit, static_argnames=("tile_b",))
def bpnet_forward(x, params, tile_b=None):
    """x: (B, N_FEATURE) float32 -> (B, N_OUTPUT) float32."""
    B = x.shape[0]
    if tile_b is None:
        tile_b = _pick_tile_b(B)
    tile_b = max(LANE, (tile_b // LANE) * LANE)
    B_pad = -(-B // tile_b) * tile_b
    n_layers = len(params)

    # Transposed input slab (IN_PAD, B_pad): features on sublanes, batch on lanes.
    # Row N_FEATURE = 1.0 is the constant channel that carries the biases.
    x_t = jnp.zeros((IN_PAD, B_pad), jnp.float32)
    x_t = x_t.at[:N_FEATURE, :B].set(x.astype(jnp.float32).T)
    x_t = x_t.at[N_FEATURE, :B].set(1.0)

    # Augmented weights: (out_pad, in_pad) = W.T with bias folded into column
    # `fan_in`; hidden layers also forward the constant-1 channel (row fan_out).
    w_aug = []
    w_specs = []
    for li, (w, b) in enumerate(params):
        fan_in, fan_out = w.shape
        in_pad = IN_PAD if li == 0 else HID_PAD
        out_pad = OUT_PAD if li == n_layers - 1 else HID_PAD
        wa = jnp.zeros((out_pad, in_pad), jnp.float32)
        wa = wa.at[:fan_out, :fan_in].set(w.astype(jnp.float32).T)
        wa = wa.at[:fan_out, fan_in].set(b.astype(jnp.float32))
        if li != n_layers - 1:
            wa = wa.at[fan_out, fan_in].set(1.0)
        w_aug.append(wa)
        # Full-array-sized block, constant index map -> VMEM-resident across steps.
        w_specs.append(pl.BlockSpec((out_pad, in_pad), lambda i: (0, 0)))

    grid = (B_pad // tile_b,)
    out_t = pl.pallas_call(
        _make_mlp_kernel(n_layers),
        out_shape=jax.ShapeDtypeStruct((1, B_pad), jnp.float32),
        grid_spec=pltpu.PrefetchScalarGridSpec(
            num_scalar_prefetch=0,
            grid=grid,
            in_specs=[pl.BlockSpec((IN_PAD, tile_b), lambda i: (0, i))] + w_specs,
            out_specs=pl.BlockSpec((1, tile_b), lambda i: (0, i)),
        ),
        compiler_params=pltpu.CompilerParams(
            dimension_semantics=("parallel",)),
    )(x_t, *w_aug)

    return out_t[0, :B].reshape(B, N_OUTPUT)


def init_params(key):
    """Deterministic init mimicking PyTorch Linear default (U(-k, k), k=1/sqrt(fan_in))."""
    dims = [N_FEATURE] + N_HIDDEN + [N_OUTPUT]
    params = []
    for i in range(len(dims) - 1):
        fan_in, fan_out = dims[i], dims[i + 1]
        key, kw, kb = jax.random.split(key, 3)
        bound = 1.0 / jnp.sqrt(fan_in)
        # stored as (in, out): y = x @ W + b
        w = jax.random.uniform(kw, (fan_in, fan_out), jnp.float32, -bound, bound)
        b = jax.random.uniform(kb, (fan_out,), jnp.float32, -bound, bound)
        params.append((w, b))
    return params


def reference_forward(x, params):
    h = x
    for i, (w, b) in enumerate(params):
        h = h @ w + b
        if i < len(params) - 1:
            h = jnp.maximum(h, 0.0)
    return h


if __name__ == "__main__":
    key = jax.random.PRNGKey(0)
    kp, kx, kx2 = jax.random.split(key, 3)

    params = init_params(kp)

    # Main run: batch big enough to exercise 2 parallel grid steps (tile_b=512).
    batch = 1024
    x = jax.random.normal(kx, (batch, N_FEATURE), jnp.float32)
    out = jax.block_until_ready(bpnet_forward(x, params))
    ref = reference_forward(x, params)
    assert out.shape == (batch, N_OUTPUT), out.shape
    assert jnp.allclose(out, ref, atol=1e-4, rtol=1e-4), (
        f"max err {jnp.max(jnp.abs(out - ref))}")

    # Ragged small batch (exercises the batch-padding path, single grid step).
    x_small = jax.random.normal(kx2, (13, N_FEATURE), jnp.float32)
    out_small = jax.block_until_ready(bpnet_forward(x_small, params))
    ref_small = reference_forward(x_small, params)
    assert out_small.shape == (13, N_OUTPUT), out_small.shape
    assert jnp.allclose(out_small, ref_small, atol=1e-4, rtol=1e-4), (
        f"max err {jnp.max(jnp.abs(out_small - ref_small))}")

    print("KERNEL_OK")
</pallas_src>

<mosaic_0001>
module attributes {stable_mosaic.version = 11 : i64} {
  func.func @kernel(%arg0: i32, %arg1: memref<8x512xf32, #tpu.memory_space<vmem>>, %arg2: memref<16x8xf32, #tpu.memory_space<vmem>>, %arg3: memref<16x16xf32, #tpu.memory_space<vmem>>, %arg4: memref<16x16xf32, #tpu.memory_space<vmem>>, %arg5: memref<16x16xf32, #tpu.memory_space<vmem>>, %arg6: memref<8x16xf32, #tpu.memory_space<vmem>>, %arg7: memref<1x512xf32, #tpu.memory_space<vmem>>) attributes {dimension_semantics = [#tpu.dimension_semantics<parallel>], iteration_bounds = array<i64: 2>, scalar_prefetch = 0 : i64, scratch_operands = 0 : i64, tpu.core_type = #tpu.core_type<tc>, window_params = [{transform_indices = @transform_0, window_bounds = array<i64: 8, 512>}, {pipeline_mode = #tpu.pipeline_mode<synchronous>, transform_indices = @transform_1, window_bounds = array<i64: 16, 8>}, {pipeline_mode = #tpu.pipeline_mode<synchronous>, transform_indices = @transform_2, window_bounds = array<i64: 16, 16>}, {pipeline_mode = #tpu.pipeline_mode<synchronous>, transform_indices = @transform_3, window_bounds = array<i64: 16, 16>}, {pipeline_mode = #tpu.pipeline_mode<synchronous>, transform_indices = @transform_4, window_bounds = array<i64: 16, 16>}, {pipeline_mode = #tpu.pipeline_mode<synchronous>, transform_indices = @transform_5, window_bounds = array<i64: 8, 16>}, {transform_indices = @transform_6, window_bounds = array<i64: 1, 512>}]} {
    %c0 = arith.constant 0 : index
    %c0_0 = arith.constant 0 : index
    %0 = vector.load %arg1[%c0, %c0_0] : memref<8x512xf32, #tpu.memory_space<vmem>>, vector<8x512xf32>
    %c0_1 = arith.constant 0 : index
    %c0_2 = arith.constant 0 : index
    %1 = vector.load %arg2[%c0_1, %c0_2] : memref<16x8xf32, #tpu.memory_space<vmem>>, vector<16x8xf32>
    %cst = arith.constant dense<0.000000e+00> : vector<16x512xf32>
    %2 = tpu.matmul %1, %0, %cst {dimension_numbers = #tpu.dot_dimension_numbers<[1], [0], [0], [1], [0, 0, 1, 1], [], []>} : vector<16x8xf32>, vector<8x512xf32>, vector<16x512xf32> -> vector<16x512xf32>
    %cst_3 = arith.constant 0.000000e+00 : f32
    %3 = vector.broadcast %cst_3 : f32 to vector<16x512xf32>
    %4 = arith.maximumf %2, %3 : vector<16x512xf32>
    %c0_4 = arith.constant 0 : index
    %c0_5 = arith.constant 0 : index
    %5 = vector.load %arg3[%c0_4, %c0_5] : memref<16x16xf32, #tpu.memory_space<vmem>>, vector<16x16xf32>
    %cst_6 = arith.constant dense<0.000000e+00> : vector<16x512xf32>
    %6 = tpu.matmul %5, %4, %cst_6 {dimension_numbers = #tpu.dot_dimension_numbers<[1], [0], [0], [1], [0, 0, 1, 1], [], []>} : vector<16x16xf32>, vector<16x512xf32>, vector<16x512xf32> -> vector<16x512xf32>
    %cst_7 = arith.constant 0.000000e+00 : f32
    %7 = vector.broadcast %cst_7 : f32 to vector<16x512xf32>
    %8 = arith.maximumf %6, %7 : vector<16x512xf32>
    %c0_8 = arith.constant 0 : index
    %c0_9 = arith.constant 0 : index
    %9 = vector.load %arg4[%c0_8, %c0_9] : memref<16x16xf32, #tpu.memory_space<vmem>>, vector<16x16xf32>
    %cst_10 = arith.constant dense<0.000000e+00> : vector<16x512xf32>
    %10 = tpu.matmul %9, %8, %cst_10 {dimension_numbers = #tpu.dot_dimension_numbers<[1], [0], [0], [1], [0, 0, 1, 1], [], []>} : vector<16x16xf32>, vector<16x512xf32>, vector<16x512xf32> -> vector<16x512xf32>
    %cst_11 = arith.constant 0.000000e+00 : f32
    %11 = vector.broadcast %cst_11 : f32 to vector<16x512xf32>
    %12 = arith.maximumf %10, %11 : vector<16x512xf32>
    %c0_12 = arith.constant 0 : index
    %c0_13 = arith.constant 0 : index
    %13 = vector.load %arg5[%c0_12, %c0_13] : memref<16x16xf32, #tpu.memory_space<vmem>>, vector<16x16xf32>
    %cst_14 = arith.constant dense<0.000000e+00> : vector<16x512xf32>
    %14 = tpu.matmul %13, %12, %cst_14 {dimension_numbers = #tpu.dot_dimension_numbers<[1], [0], [0], [1], [0, 0, 1, 1], [], []>} : vector<16x16xf32>, vector<16x512xf32>, vector<16x512xf32> -> vector<16x512xf32>
    %cst_15 = arith.constant 0.000000e+00 : f32
    %15 = vector.broadcast %cst_15 : f32 to vector<16x512xf32>
    %16 = arith.maximumf %14, %15 : vector<16x512xf32>
    %c0_16 = arith.constant 0 : index
    %c0_17 = arith.constant 0 : index
    %17 = vector.load %arg6[%c0_16, %c0_17] : memref<8x16xf32, #tpu.memory_space<vmem>>, vector<8x16xf32>
    %cst_18 = arith.constant dense<0.000000e+00> : vector<8x512xf32>
    %18 = tpu.matmul %17, %16, %cst_18 {dimension_numbers = #tpu.dot_dimension_numbers<[1], [0], [0], [1], [0, 0, 1, 1], [], []>} : vector<8x16xf32>, vector<16x512xf32>, vector<8x512xf32> -> vector<8x512xf32>
    %19 = vector.extract_strided_slice %18 {offsets = [0, 0], sizes = [1, 512], strides = [1, 1]} : vector<8x512xf32> to vector<1x512xf32>
    %c0_19 = arith.constant 0 : index
    %c0_20 = arith.constant 0 : index
    %20 = vector.load %arg7[%c0_19, %c0_20] : memref<1x512xf32, #tpu.memory_space<vmem>>, vector<1x512xf32>
    tpu.vector_store %arg7[%c0_19, %c0_20], %19 {strides = array<i32>} : memref<1x512xf32, #tpu.memory_space<vmem>>, vector<1x512xf32>,
    return
  }
  func.func @transform_0(%arg0: i32) -> (i32, i32) {
    %c0_i32 = arith.constant 0 : i32
    %c0_i32_0 = arith.constant 0 : i32
    return %c0_i32, %arg0 : i32, i32
  }
  func.func @transform_1(%arg0: i32) -> (i32, i32) {
    %c0_i32 = arith.constant 0 : i32
    %c0_i32_0 = arith.constant 0 : i32
    %c0_i32_1 = arith.constant 0 : i32
    return %c0_i32, %c0_i32_0 : i32, i32
  }
  func.func @transform_2(%arg0: i32) -> (i32, i32) {
    %c0_i32 = arith.constant 0 : i32
    %c0_i32_0 = arith.constant 0 : i32
    %c0_i32_1 = arith.constant 0 : i32
    return %c0_i32, %c0_i32_0 : i32, i32
  }
  func.func @transform_3(%arg0: i32) -> (i32, i32) {
    %c0_i32 = arith.constant 0 : i32
    %c0_i32_0 = arith.constant 0 : i32
    %c0_i32_1 = arith.constant 0 : i32
    return %c0_i32, %c0_i32_0 : i32, i32
  }
  func.func @transform_4(%arg0: i32) -> (i32, i32) {
    %c0_i32 = arith.constant 0 : i32
    %c0_i32_0 = arith.constant 0 : i32
    %c0_i32_1 = arith.constant 0 : i32
    return %c0_i32, %c0_i32_0 : i32, i32
  }
  func.func @transform_5(%arg0: i32) -> (i32, i32) {
    %c0_i32 = arith.constant 0 : i32
    %c0_i32_0 = arith.constant 0 : i32
    %c0_i32_1 = arith.constant 0 : i32
    return %c0_i32, %c0_i32_0 : i32, i32
  }
  func.func @transform_6(%arg0: i32) -> (i32, i32) {
    %c0_i32 = arith.constant 0 : i32
    %c0_i32_0 = arith.constant 0 : i32
    return %c0_i32, %arg0 : i32, i32
  }
}

</mosaic_0001>

<bundles_post_ra>
// kernel: bpnet_forward.1
= control target key start
LH: loop header
LB: loop body
LE: loop exit
PB: predicated region body
PF: predicated region fallthrough
CT: control target
= control target key end

     0   :  { %11 = vsyncpa [#allocation3], 0  ;;  %s1557_s0 = inlined_call_operand.vmem [shape: f32[8,1024], index: 0, kind: input, shape index: {}]   ;;  %s1558_s1 = inlined_call_operand.vmem [shape: f32[16,8], index: 1, kind: input, shape index: {}]   ;;  %s1559_s2 = inlined_call_operand.vmem [shape: f32[16,16], index: 2, kind: input, shape index: {}]   ;;  %s1560_s3 = inlined_call_operand.vmem [shape: f32[16,16], index: 3, kind: input, shape index: {}]   ;;  %s1561_s4 = inlined_call_operand.vmem [shape: f32[16,16], index: 4, kind: input, shape index: {}]   ;;  %s1562_s5 = inlined_call_operand.vmem [shape: f32[8,16], index: 5, kind: input, shape index: {}]   ;;  %s1563_s6 = inlined_call_operand.hbm [shape: f32[1,1024], index: 6, kind: output, shape index: {}]  }
   0x1   :  { %13 = vsyncpa [#allocation3 + $0x1], 0  ;;  %s1399_s21 = smov 0   ;;  %s1401_s22 = smov 0  }
   0x2   :  { %s1403_s23 = smov 0   ;;  %s1405_s24 = smov 0  }
   0x3 LB: > { %s1420_s25 = sadd.s32 4294967295, %s1359_s24   ;;  %s1193_s26 = sadd.s32 4294967294, %s1359_s24   ;;  %s1359_s24 = sphi %s1405_s24, %s1569_s24   ;;  %s1355_s23 = sphi %s1403_s23, %s1568_s23   ;;  %s1351_s22 = sphi %s1401_s22, %s1567_s22   ;;  %s1347_s21 = sphi %s1399_s21, %s1566_s21  }
   0x4   : > { %s1424_s27 = sadd.s32 1, %s1359_s24   ;;  %s157_s28 = sadd.s32 1, %s1355_s23 }
   0x5   : > { %s154_s29 = ssub.s32 %s1359_s24, %s1424_s27  ;;  %p167_p0 = scmp.ne.s32.totalorder %s1355_s23, %s1351_s22 }
   0x6   : > { %p155_p1 = scmp.eq.s32.totalorder %s154_s29, 0  ;;  %p168_p2 = scmp.eq.s32.totalorder %s1420_s25, 1 }
   0x7   : > { %p173_p3 = scmp.ne.s32.totalorder %s1351_s22, %s1347_s21  ;;  %p174_p4 = scmp.eq.s32.totalorder %s1193_s26, 1 }
   0x8   : > { %s1435_s30 = scalar_select %p155_p1, %s1355_s23, %s157_s28  }
   0x9   : > { %p1437_p5 = por %p168_p2, %p167_p0  ;;  %p1441_p6 = por %p174_p4, %p173_p3 }
   0xa   : > { %p1196_p7 = scmp.ge.s32.totalorder %s1359_s24, 1  ;;  %p216_p8 = scmp.lt.s32.totalorder %s1359_s24, 3 }
   0xc   : > { %p217_p9 = pnand %p1196_p7, %p216_p8 }
   0xd   : > { %s1198_s9 = sshll.u32 (!%p217_p9), %s1420_s25, 2  ;;  %v1361_v0 = vmov (!%p217_p9), 0.0   ;;  %v257_v1 = vld [vmem:[%s1558_s1] sm:$0xff] (!%p217_p9)  ;;  %vm259_vm0 = vcmask (!%p217_p9), 64512   ;;  %v258_v6 = vld [vmem:[%s1558_s1 + $0x8] sm:$0xff] (!%p217_p9)  ;;  %vm430_vm1 = vcmask (!%p217_p9), 130048  }
   0xe   : > { %220 = sbr.rel (%p217_p9) target bundleno = 1162 (0x48a), region = 44  ;;  %p247_p10 = scmp.lt.s32.totalorder (!%p217_p9), %s1198_s9, 7  ;;  %330 = vmatprep.mubr.f32.mxu0 (!%p217_p9), %v1361_v0  ;;  %407 = vmatprep.mubr.f32.mxu1 (!%p217_p9), %v1361_v0  ;;  %v428_v27 = vld [vmem:[%s1559_s2] sm:$0xff] (!%p217_p9)  ;;  %v429_v28 = vld [vmem:[%s1559_s2 + $0x8] sm:$0xff] (!%p217_p9) }
   0xf   : > { %v599_v49 = vld [vmem:[%s1560_s3] sm:$0xff] (!%p217_p9)  ;;  %v600_v50 = vld [vmem:[%s1560_s3 + $0x8] sm:$0xff] (!%p217_p9)  ;;  %s243_s17 = sand.u32 (!%p217_p9), 1, %s1351_s22   ;;  %s1223_s19 = sshll.u32 (!%p217_p9), %s1420_s25, 6 }
  0x10   : > { %s1197_s18 = sshll.u32 (!%p217_p9), %s243_s17, 2  ;;  %s1363_s25 = smov (!%p217_p9), [#allocation2]  }
  0x11   : > { %s245_s20 = scalar_lea.vmem (!%p217_p9), [#allocation2], %s1197_s18  ;;  %s1301_s12 = sshll.u32 (!%p217_p9), %s1363_s25, 4  ;;  %s1302_s12 = int_to_ptr.vmem [resolvable:$false] %s1301_s12 }
  0x12   : > { %s1134_s26 = sshll.u32 (!%p217_p9), %s245_s20, 4  ;;  %s1517_s26 = int_to_ptr.vmem [resolvable:$true] %s1134_s26 }
  0x13   : > { %s1297_s11 = scalar_lea.vmem (!%p217_p9), %s1517_s26, 64  ;;  %p1304_p0 = scmp.lt.s32.totalorder (!%p217_p9), %s1517_s26, %s1302_s12 }
  0x14   : > { %p1298_p11 = scmp.ne.s32.totalorder (!%p217_p9), %s1517_s26, %s1297_s11 }
  0x15   : > { %s1571_s9 = smov (!%p247_p10, %s1198_s9), 7 }
  0x16   : > { %s1199_s10 = sshll.u32 %s1571_s9, 3  ;;  %s1515_s9 = scalar_lea.hbm %s1563_s6, %s1223_s19 }
  0x17   : > { %s250_s13 = scalar_lea.vmem %s1557_s0, %s1199_s10  ;;  %s1120_s10 = scalar_lea.sflag [#allocation3], %s243_s17 }
  0x18   : > { %v254_v2 = vld [vmem:[%s250_s13 + $0x8] sm:$0xff]  ;;  %v256_v3 = vld [vmem:[%s250_s13 + $0x18] sm:$0xff]  ;;  %v253_v4 = vld [vmem:[%s250_s13] sm:$0xff]  ;;  %p1299_p12 = pnand %p1298_p11, %p1437_p5 }
  0x19   : > { %266 = vmatprep.subr.mxu0 %v254_v2  ;;  %343 = vmatprep.subr.mxu1 %v256_v3  ;;  %v255_v5 = vld [vmem:[%s250_s13 + $0x10] sm:$0xff]  ;;  %s1303_s13 = scalar_lea.vmem %s1302_s12, 128 }
  0x1a   : > { %267 = vmatpush1.msra.mxu0 %v253_v4  ;;  %344 = vmatpush1.msra.mxu1 %v255_v5  ;;  %p1300_p13 = pneg %p1299_p12  ;;  %p1305_p1 = scmp.lt.s32.totalorder %s1303_s13, %s1297_s11 }
  0x1b   : > { %1200 = vmatmul.mubr.msk.f32.vlgmr.msra.gmra.mrb[0].mxu0 %vm259_vm0, %v257_v1  ;;  %1202 = vmatmul.mubr.msk.f32.vlgmr.msra.gmra.mrb[0].mxu1 %vm259_vm0, %v257_v1 }
  0x1c   : > { %336 = vmatprep.mubr.f32.mxu0 %v1361_v0  ;;  %413 = vmatprep.mubr.f32.mxu1 %v1361_v0  ;;  %p1306_p2 = por %p1305_p1, %p1304_p0 }
  0x1e   : > { %p1307_p3 = pnand %p1306_p2, %p1300_p13 }
  0x1f   : > { %1201 = vmatmul.mubr.msk.f32.gmra.mrb[2].mxu0 %vm259_vm0, %v258_v6  ;;  %1203 = vmatmul.mubr.msk.f32.gmra.mrb[2].mxu1 %vm259_vm0, %v258_v6 }
  0x20   : > { %501 = vmatprep.mubr.f32.mxu0 %v1361_v0  ;;  %578 = vmatprep.mubr.f32.mxu1 %v1361_v0 }
  0xee   : > { %v332_v7 = vpop.f32.mrb[0].mxu0  ;;  %v409_v8 = vpop.f32.mrb[0].mxu1 }
  0xef   : > { %v334_v9 = vpop.f32.mrb[1].mxu0  ;;  %v411_v10 = vpop.f32.mrb[1].mxu1  ;;  %v420_v13 = vmax.f32 %v332_v7, 0.0  ;;  %v422_v14 = vmax.f32 %v409_v8, 0.0  ;;  %v769_v8 = vld [vmem:[%s1561_s4] sm:$0xff] }
  0xf0   : > { %v421_v19 = vmax.f32 %v334_v9, 0.0  ;;  %v423_v20 = vmax.f32 %v411_v10, 0.0  ;;  %v770_v9 = vld [vmem:[%s1561_s4 + $0x8] sm:$0xff] }
  0xf2   : > { %v338_v11 = vpop.f32.mrb[2].mxu0  ;;  %v415_v12 = vpop.f32.mrb[2].mxu1 }
  0xf3   : > { %v424_v15 = vmax.f32 %v338_v11, 0.0  ;;  %v426_v16 = vmax.f32 %v415_v12, 0.0  ;;  %v340_v17 = vpop.f32.mrb[3].mxu0  ;;  %v417_v18 = vpop.f32.mrb[3].mxu1 }
  0xf4   : > { %v425_v21 = vmax.f32 %v340_v17, 0.0  ;;  %v427_v22 = vmax.f32 %v417_v18, 0.0 }
  0xf5   : > { %v1226_v23 = vpack.c.bf16 %v424_v15, %v420_v13  ;;  %v1230_v24 = vpack.c.bf16 %v426_v16, %v422_v14 }
  0xf6   : > { %v1224_v25 = vpack.c.bf16 %v425_v21, %v421_v19  ;;  %v1228_v26 = vpack.c.bf16 %v427_v22, %v423_v20 }
  0xf8   : > { %1225 = vmatprep.subr.bf16.mxu0 %v1224_v25  ;;  %1229 = vmatprep.subr.bf16.mxu1 %v1228_v26 }
  0xf9   : > { %1227 = vmatpush1.bf16.msra.mxu0 %v1226_v23  ;;  %1231 = vmatpush1.bf16.msra.mxu1 %v1230_v24 }
  0xfc   : > { %1204 = vmatmul.mubr.msk.f32.vlgmr.msra.gmra.mrb[4].mxu0 %vm430_vm1, %v428_v27  ;;  %1206 = vmatmul.mubr.msk.f32.vlgmr.msra.gmra.mrb[4].mxu1 %vm430_vm1, %v428_v27 }
  0xfd   : > { %507 = vmatprep.mubr.f32.mxu0 %v1361_v0  ;;  %584 = vmatprep.mubr.f32.mxu1 %v1361_v0 }
 0x100   : > { %1205 = vmatmul.mubr.msk.f32.gmra.mrb[6].mxu0 %vm430_vm1, %v429_v28  ;;  %1207 = vmatmul.mubr.msk.f32.gmra.mrb[6].mxu1 %vm430_vm1, %v429_v28 }
 0x101   : > { %671 = vmatprep.mubr.f32.mxu0 %v1361_v0  ;;  %748 = vmatprep.mubr.f32.mxu1 %v1361_v0 }
 0x1cf   : > { %v503_v29 = vpop.f32.mrb[4].mxu0  ;;  %v580_v30 = vpop.f32.mrb[4].mxu1 }
 0x1d0   : > { %v505_v31 = vpop.f32.mrb[5].mxu0  ;;  %v582_v32 = vpop.f32.mrb[5].mxu1  ;;  %v591_v35 = vmax.f32 %v503_v29, 0.0  ;;  %v593_v36 = vmax.f32 %v580_v30, 0.0  ;;  %v939_v29 = vld [vmem:[%s1562_s5] sm:$0xff] }
 0x1d1   : > { %v592_v41 = vmax.f32 %v505_v31, 0.0  ;;  %v594_v42 = vmax.f32 %v582_v32, 0.0  ;;  %v1362_v30 = vmov 1966171168   ;;  %v1094_v32 = vlaneseq }
 0x1d2   : > { %v1092_v31 = vunpack.c.l.s4 %v1362_v30 }
 0x1d3   : > { %v509_v33 = vpop.f32.mrb[6].mxu0  ;;  %v586_v34 = vpop.f32.mrb[6].mxu1  ;;  %vm1116_vm2 = vcmp.lt.s32.totalorder %v1094_v32, 512 }
 0x1d4   : > { %v595_v37 = vmax.f32 %v509_v33, 0.0  ;;  %v597_v38 = vmax.f32 %v586_v34, 0.0  ;;  %v511_v39 = vpop.f32.mrb[7].mxu0  ;;  %v588_v40 = vpop.f32.mrb[7].mxu1  ;;  %v1093_v33 = vunpack.c.0.s8 %v1092_v31  ;;  %v1095_v34 = vshrl.u32 %v1094_v32, 7 }
 0x1d5   : > { %v596_v43 = vmax.f32 %v511_v39, 0.0  ;;  %v598_v44 = vmax.f32 %v588_v40, 0.0 }
 0x1d6   : > { %v1234_v45 = vpack.c.bf16 %v595_v37, %v591_v35  ;;  %v1238_v46 = vpack.c.bf16 %v597_v38, %v593_v36  ;;  %v1096_v37 = vsub.s32 %v1093_v33, %v1095_v34 }
 0x1d7   : > { %v1232_v47 = vpack.c.bf16 %v596_v43, %v592_v41  ;;  %v1236_v48 = vpack.c.bf16 %v598_v44, %v594_v42 }
 0x1d9   : > { %1233 = vmatprep.subr.bf16.mxu0 %v1232_v47  ;;  %1237 = vmatprep.subr.bf16.mxu1 %v1236_v48 }
 0x1da   : > { %1235 = vmatpush1.bf16.msra.mxu0 %v1234_v45  ;;  %1239 = vmatpush1.bf16.msra.mxu1 %v1238_v46 }
 0x1dd   : > { %1208 = vmatmul.mubr.msk.f32.vlgmr.msra.gmra.mrb[8].mxu0 %vm430_vm1, %v599_v49  ;;  %1210 = vmatmul.mubr.msk.f32.vlgmr.msra.gmra.mrb[8].mxu1 %vm430_vm1, %v599_v49 }
 0x1de   : > { %677 = vmatprep.mubr.f32.mxu0 %v1361_v0  ;;  %754 = vmatprep.mubr.f32.mxu1 %v1361_v0 }
 0x1e1   : > { %1209 = vmatmul.mubr.msk.f32.gmra.mrb[10].mxu0 %vm430_vm1, %v600_v50  ;;  %1211 = vmatmul.mubr.msk.f32.gmra.mrb[10].mxu1 %vm430_vm1, %v600_v50 }
 0x1e2   : > { %841 = vmatprep.mubr.f32.mxu0 %v1361_v0  ;;  %918 = vmatprep.mubr.f32.mxu1 %v1361_v0 }
 0x2b0   : > { %v673_v51 = vpop.f32.mrb[8].mxu0  ;;  %v750_v52 = vpop.f32.mrb[8].mxu1 }
 0x2b1   : > { %v675_v53 = vpop.f32.mrb[9].mxu0  ;;  %v752_v54 = vpop.f32.mrb[9].mxu1  ;;  %v761_v57 = vmax.f32 %v673_v51, 0.0  ;;  %v763_v58 = vmax.f32 %v750_v52, 0.0 }
 0x2b2   : > { %v762_v63 = vmax.f32 %v675_v53, 0.0  ;;  %v764_v1 = vmax.f32 %v752_v54, 0.0 }
 0x2b4   : > { %v679_v55 = vpop.f32.mrb[10].mxu0  ;;  %v756_v56 = vpop.f32.mrb[10].mxu1 }
 0x2b5   : > { %v765_v59 = vmax.f32 %v679_v55, 0.0  ;;  %v767_v60 = vmax.f32 %v756_v56, 0.0  ;;  %v681_v61 = vpop.f32.mrb[11].mxu0  ;;  %v758_v62 = vpop.f32.mrb[11].mxu1 }
 0x2b6   : > { %v766_v2 = vmax.f32 %v681_v61, 0.0  ;;  %v768_v3 = vmax.f32 %v758_v62, 0.0 }
 0x2b7   : > { %v1242_v4 = vpack.c.bf16 %v765_v59, %v761_v57  ;;  %v1246_v5 = vpack.c.bf16 %v767_v60, %v763_v58 }
 0x2b8   : > { %v1240_v6 = vpack.c.bf16 %v766_v2, %v762_v63  ;;  %v1244_v7 = vpack.c.bf16 %v768_v3, %v764_v1 }
 0x2ba   : > { %1241 = vmatprep.subr.bf16.mxu0 %v1240_v6  ;;  %1245 = vmatprep.subr.bf16.mxu1 %v1244_v7 }
 0x2bb   : > { %1243 = vmatpush1.bf16.msra.mxu0 %v1242_v4  ;;  %1247 = vmatpush1.bf16.msra.mxu1 %v1246_v5 }
 0x2be   : > { %1212 = vmatmul.mubr.msk.f32.vlgmr.msra.gmra.mrb[12].mxu0 %vm430_vm1, %v769_v8  ;;  %1214 = vmatmul.mubr.msk.f32.vlgmr.msra.gmra.mrb[12].mxu1 %vm430_vm1, %v769_v8 }
 0x2bf   : > { %847 = vmatprep.mubr.f32.mxu0 %v1361_v0  ;;  %924 = vmatprep.mubr.f32.mxu1 %v1361_v0 }
 0x2c2   : > { %1213 = vmatmul.mubr.msk.f32.gmra.mrb[14].mxu0 %vm430_vm1, %v770_v9  ;;  %1215 = vmatmul.mubr.msk.f32.gmra.mrb[14].mxu1 %vm430_vm1, %v770_v9 }
 0x2c3   : > { %1007 = vmatprep.mubr.f32.mxu0 %v1361_v0  ;;  %1078 = vmatprep.mubr.f32.mxu1 %v1361_v0 }
 0x391   : > { %v843_v10 = vpop.f32.mrb[12].mxu0  ;;  %v920_v11 = vpop.f32.mrb[12].mxu1 }
 0x392   : > { %v845_v12 = vpop.f32.mrb[13].mxu0  ;;  %v922_v13 = vpop.f32.mrb[13].mxu1  ;;  %v931_v16 = vmax.f32 %v843_v10, 0.0  ;;  %v933_v17 = vmax.f32 %v920_v11, 0.0 }
 0x393   : > { %v932_v22 = vmax.f32 %v845_v12, 0.0  ;;  %v934_v23 = vmax.f32 %v922_v13, 0.0 }
 0x395   : > { %v849_v14 = vpop.f32.mrb[14].mxu0  ;;  %v926_v15 = vpop.f32.mrb[14].mxu1 }
 0x396   : > { %v935_v18 = vmax.f32 %v849_v14, 0.0  ;;  %v937_v19 = vmax.f32 %v926_v15, 0.0  ;;  %v851_v20 = vpop.f32.mrb[15].mxu0  ;;  %v928_v21 = vpop.f32.mrb[15].mxu1 }
 0x397   : > { %v936_v24 = vmax.f32 %v851_v20, 0.0  ;;  %v938_v25 = vmax.f32 %v928_v21, 0.0 }
 0x398   : > { %v1250_v26 = vpack.c.bf16 %v935_v18, %v931_v16  ;;  %v1254_v27 = vpack.c.bf16 %v937_v19, %v933_v17 }
 0x399   : > { %v1248_v0 = vpack.c.bf16 %v936_v24, %v932_v22  ;;  %v1252_v28 = vpack.c.bf16 %v938_v25, %v934_v23 }
 0x39b   : > { %1249 = vmatprep.subr.bf16.mxu0 %v1248_v0  ;;  %1253 = vmatprep.subr.bf16.mxu1 %v1252_v28 }
 0x39c   : > { %1251 = vmatpush1.bf16.msra.mxu0 %v1250_v26  ;;  %1255 = vmatpush1.bf16.msra.mxu1 %v1254_v27 }
 0x39f   : > { %1216 = vmatmul.mubr.msk.f32.vlgmr.msra.gmra.mrb[16].mxu0 %vm430_vm1, %v939_v29  ;;  %1217 = vmatmul.mubr.msk.f32.vlgmr.msra.gmra.mrb[16].mxu1 %vm430_vm1, %v939_v29 }
 0x472   : > { %v1009_v35 = vpop.f32.mrb[16].mxu0  ;;  %v1080_v36 = vpop.f32.mrb[16].mxu1 }
 0x473   : > { %v1011_v38 = vpop.f32.mrb[17].mxu0  ;;  %v1082_v39 = vpop.f32.mrb[17].mxu1 }
 0x474   : > { %v1089_v40 = vcombine.low %v1009_v35, %v1011_v38  ;;  %v1090_v41 = vcombine.low %v1080_v36, %v1082_v39 }
 0x476   : > { %v1097_v42 = vrot.slane %v1089_v40, %v1096_v37  ;;  %v1104_v43 = vrot.slane %v1090_v41, %v1096_v37 }
 0x478   : > { %v1105_v44 = vcombine.low %v1097_v42, %v1104_v43 }
 0x47a   : > { %v1112_v45 = vrot.slane %v1105_v44, %v1096_v37 }
 0x47c   : > { %1118 = vst.msk [vmem:[%s245_s20] sm:$0xf] %vm1116_vm2, %v1112_v45 }
 0x47d   : > { %1310 = shalt.err (!%p1307_p3)
}
 0x47e   : > { %s1311_s14 = scalar_lea.hbm %s1515_s9, 64  ;;  %s1315_s17 = scalar_lea.hbm %s1563_s6, 128 }
 0x47f   : > { %p1312_p4 = scmp.ne.s32.totalorder %s1515_s9, %s1311_s14  ;;  %p1316_p9 = scmp.lt.u32.totalorder %s1515_s9, %s1563_s6 }
 0x480   : > { %p1317_p10 = scmp.lt.u32.totalorder %s1315_s17, %s1311_s14  ;;  %p1319_p12 = scmp.lt.u32.totalorder %s1311_s14, %s1515_s9 }
 0x481   : > { %p1313_p7 = pnand %p1312_p4, %p1437_p5 }
 0x482   : > { %p1318_p11 = por %p1317_p10, %p1316_p9 }
 0x483   : > { %p1314_p8 = pneg %p1313_p7 }
 0x484   : > { %p1320_p13 = por %p1319_p12, %p1318_p11 }
 0x486   : > { %p1321_p0 = pnand %p1320_p13, %p1314_p8 }
 0x488   : > { %1324 = shalt.err (!%p1321_p0)
}
 0x489   : > { %1256 = dma.vmem_to_hbm [thread:$0]  (%p1437_p5), %s1517_s26, 64, %s1515_s9, %s1120_s10  }
 0x48a PF: > { %p1262_p1 = scmp.ge.s32.totalorder %s1359_s24, 2  ;;  %s1146_s20 = sand.u32 1, %s1347_s21  }
 0x48b   : > { %s1147_s28 = scalar_lea.sflag [#allocation3], %s1146_s20 }
 0x48c   : > { %p1259_p2 = pnand %p1262_p1, %p1441_p6 }
 0x48e   : > { %1342 = dma.done.wait (!%p1259_p2), %s1147_s28, 64  }
 0x48f   : > { %1344 = vsyncadd (!%p1259_p2), %s1147_s28, 4294967232  ;;  %p16_p3 = scmp.ge.s32.totalorder %s1424_s27, 4   ;;  %s1566_s21 = smov %s1351_s22 }
 0x490   : > { %s1567_s22 = smov %s1355_s23  ;;  %s1568_s23 = smov %s1435_s30 }
 0x491   : > { %s1569_s24 = smov %s1424_s27  ;;  %18 = sbr.rel (!%p16_p3) target bundleno = 3 (0x3), region = 79 }
 0x498   :  { %1152 = vsyncpa [#allocation3], 1 }
 0x499   :  { %1154 = vsyncpa [#allocation3 + $0x1], 1 }

</bundles_post_ra>
